<compile_context>
chip_gen: v5e
topology: v5e:2x2
jax: 0.10.0
libtpu: 0.0.40
codegen_flags: <defaults>
</compile_context>

<pallas_src>
import jax
import jax.numpy as jnp
from jax import lax
from jax.experimental import pallas as pl
from jax.experimental.pallas import tpu as pltpu

# ---- problem sizes (small, consistent with the module) ----
OBS_DIM = 16
HIDDEN = 32
N_ACTIONS = 8
POP_SIZE = 4
HEAD_OUT = N_ACTIONS + 1            # per-member fused [policy logits | value]
HEAD_TOTAL = POP_SIZE * HEAD_OUT    # all members' heads side by side (36)
OBS_AUG = OBS_DIM + 1               # obs + constant-1 feature (shared bias)
HID_AUG = HIDDEN + 1                # hidden + constant-1 feature (head biases)
MAX_TILE = 512                      # batch rows per grid step (mem-bound sweet spot)


def evoac_fused_kernel(x_ref, wsh_ref, whd_ref, out_ref):
    """One grid step = one batch tile; shared net + ALL population heads fused.

    x_ref   : (TB, OBS_AUG)          obs with a trailing ones column
    wsh_ref : (OBS_AUG, HID_AUG)     shared weights; bias in last row;
                                     last column emits a constant 1
    whd_ref : (HID_AUG, HEAD_TOTAL)  all members' [policy|value] heads;
                                     biases in the constant-1 row
    out_ref : (TB, HEAD_TOTAL)
    """
    shared = jnp.maximum(
        jnp.dot(x_ref[...], wsh_ref[...], preferred_element_type=jnp.float32),
        0.0)
    out_ref[...] = jnp.dot(
        shared, whd_ref[...], preferred_element_type=jnp.float32
    ).astype(out_ref.dtype)


def _tile_plan(b_total):
    """Pick (padded_batch, batch_tile): pad to a sublane multiple, cap tile."""
    if b_total <= MAX_TILE:
        tb = max(8, ((b_total + 7) // 8) * 8)
        return tb, tb
    padded = ((b_total + MAX_TILE - 1) // MAX_TILE) * MAX_TILE
    return padded, MAX_TILE


@jax.jit
def evoac_forward_all(x, w_shared_aug, w_head_aug):
    """Single pallas_call evaluating the shared net and EVERY population
    member's policy head plus the value head over the whole batch.

    Returns (B, HEAD_TOTAL); member m's policy logits are columns
    [m*HEAD_OUT : m*HEAD_OUT + N_ACTIONS] and its value estimate is column
    m*HEAD_OUT + N_ACTIONS."""
    b_total = x.shape[0]
    padded_b, tb = _tile_plan(b_total)
    nb = padded_b // tb

    # Constant-1 feature carries the shared bias; zero-pad ragged batch rows
    # (padded rows are sliced off below, never observed).
    ones = jnp.ones((b_total, 1), x.dtype)
    x_aug = jnp.concatenate([x, ones], axis=1)
    if padded_b != b_total:
        x_aug = jnp.pad(x_aug, ((0, padded_b - b_total), (0, 0)))

    out = pl.pallas_call(
        evoac_fused_kernel,
        out_shape=jax.ShapeDtypeStruct((padded_b, HEAD_TOTAL), jnp.float32),
        grid_spec=pl.GridSpec(
            grid=(nb,),
            in_specs=[
                pl.BlockSpec((tb, OBS_AUG), lambda b: (b, 0)),
                # Weights are tiny (<10 KB total) and block-constant across the
                # grid, so they stay VMEM-resident: no per-step weight DMA.
                pl.BlockSpec((OBS_AUG, HID_AUG), lambda b: (0, 0)),
                pl.BlockSpec((HID_AUG, HEAD_TOTAL), lambda b: (0, 0)),
            ],
            out_specs=pl.BlockSpec((tb, HEAD_TOTAL), lambda b: (b, 0)),
        ),
        compiler_params=pltpu.CompilerParams(
            dimension_semantics=("parallel",)),
    )(x_aug, w_shared_aug, w_head_aug)
    return out[:b_total]


def evoac_forward(x, packed_params, pop_idx):
    """Pallas equivalent of EvoACModel.forward(x, pop_idx) -> (policy, value).
    Member selection is a column slice of the fused-head output (works for
    Python ints and traced device scalars alike)."""
    w_shared_aug, w_head_aug = packed_params
    out = evoac_forward_all(x, w_shared_aug, w_head_aug)
    head = lax.dynamic_slice_in_dim(out, pop_idx * HEAD_OUT, HEAD_OUT, axis=1)
    return head[:, :N_ACTIONS], head[:, N_ACTIONS:]


def init_params(key):
    """Deterministic parameter init. Weights stored as [in, out]
    (pre-transposed relative to torch.nn.Linear's [out, in])."""
    k1, k2, k3, k4, k5, k6 = jax.random.split(key, 6)
    ws = jax.random.normal(k1, (OBS_DIM, HIDDEN), jnp.float32) * 0.1
    bs = jax.random.normal(k2, (1, HIDDEN), jnp.float32) * 0.1
    wp = jax.random.normal(k3, (POP_SIZE, HIDDEN, N_ACTIONS), jnp.float32) * 0.1
    bp = jax.random.normal(k4, (POP_SIZE, 1, N_ACTIONS), jnp.float32) * 0.1
    wv = jax.random.normal(k5, (HIDDEN, 1), jnp.float32) * 0.1
    bv = jax.random.normal(k6, (1, 1), jnp.float32) * 0.1
    return ws, bs, wp, bp, wv, bv


def pack_params(ws, bs, wp, bp, wv, bv):
    """Pack the module's parameters for the fused kernel.

    Shared weights  (OBS_AUG, HID_AUG): bias in the constant-1 input row;
    column HIDDEN is driven only by that row with weight 1, so after ReLU the
    hidden vector carries an exact constant-1 feature for the head biases.

    Head weights (HID_AUG, HEAD_TOTAL): every member's policy columns, then
    its value column, laid side by side; per-member biases live in the
    constant-1 hidden row."""
    w_shared_aug = jnp.zeros((OBS_AUG, HID_AUG), jnp.float32)
    w_shared_aug = w_shared_aug.at[:OBS_DIM, :HIDDEN].set(ws)
    w_shared_aug = w_shared_aug.at[OBS_DIM, :HIDDEN].set(bs[0])
    w_shared_aug = w_shared_aug.at[OBS_DIM, HIDDEN].set(1.0)

    w_head_aug = jnp.zeros((HID_AUG, HEAD_TOTAL), jnp.float32)
    for m in range(POP_SIZE):
        c = m * HEAD_OUT
        w_head_aug = w_head_aug.at[:HIDDEN, c:c + N_ACTIONS].set(wp[m])
        w_head_aug = w_head_aug.at[HIDDEN, c:c + N_ACTIONS].set(bp[m, 0])
        w_head_aug = w_head_aug.at[:HIDDEN, c + N_ACTIONS].set(wv[:, 0])
        w_head_aug = w_head_aug.at[HIDDEN, c + N_ACTIONS].set(bv[0, 0])
    return w_shared_aug, w_head_aug


def reference_forward(x, params, pop_idx):
    ws, bs, wp, bp, wv, bv = params
    shared = jnp.maximum(x @ ws + bs, 0.0)
    policy = shared @ wp[pop_idx] + bp[pop_idx]
    value = shared @ wv + bv
    return policy, value


# TODO(synk): get_action's Categorical sampling / log_prob / entropy is plain
# JAX glue (not a kernel hot path); Adam / extract_params / insert_params /
# extract_grads are host-side parameter plumbing, not kernels.

if __name__ == "__main__":
    key = jax.random.PRNGKey(0)
    kx, kp = jax.random.split(key)

    raw_params = init_params(kp)
    packed = pack_params(*raw_params)

    # --- single-member forward (EvoACModel.forward semantics) ---
    BATCH = 128
    x = jax.random.normal(kx, (BATCH, OBS_DIM), jnp.float32)
    pop_idx = 2
    policy, value = evoac_forward(x, packed, pop_idx)
    jax.block_until_ready((policy, value))

    ref_policy, ref_value = reference_forward(x, raw_params, pop_idx)
    assert policy.shape == (BATCH, N_ACTIONS) and value.shape == (BATCH, 1)
    assert jnp.allclose(policy, ref_policy, atol=1e-4, rtol=1e-4)
    assert jnp.allclose(value, ref_value, atol=1e-4, rtol=1e-4)

    # --- whole-population evaluation: one kernel launch covers all members ---
    out_all = evoac_forward_all(x, packed[0], packed[1])
    jax.block_until_ready(out_all)
    for p in range(POP_SIZE):
        rp, rv = reference_forward(x, raw_params, p)
        c = p * HEAD_OUT
        assert jnp.allclose(out_all[:, c:c + N_ACTIONS], rp,
                            atol=1e-4, rtol=1e-4)
        assert jnp.allclose(out_all[:, c + N_ACTIONS:c + HEAD_OUT], rv,
                            atol=1e-4, rtol=1e-4)

    # --- ragged small batch (exercises sublane padding path) ---
    x_small = jax.random.normal(jax.random.PRNGKey(1), (37, OBS_DIM), jnp.float32)
    p_s, v_s = evoac_forward(x_small, packed, 1)
    jax.block_until_ready((p_s, v_s))
    rp_s, rv_s = reference_forward(x_small, raw_params, 1)
    assert p_s.shape == (37, N_ACTIONS) and v_s.shape == (37, 1)
    assert jnp.allclose(p_s, rp_s, atol=1e-4, rtol=1e-4)
    assert jnp.allclose(v_s, rv_s, atol=1e-4, rtol=1e-4)

    # --- ragged large batch (exercises multi-tile grid + batch padding) ---
    x_big = jax.random.normal(jax.random.PRNGKey(2), (600, OBS_DIM), jnp.float32)
    p_b, v_b = evoac_forward(x_big, packed, 3)
    jax.block_until_ready((p_b, v_b))
    rp_b, rv_b = reference_forward(x_big, raw_params, 3)
    assert p_b.shape == (600, N_ACTIONS) and v_b.shape == (600, 1)
    assert jnp.allclose(p_b, rp_b, atol=1e-4, rtol=1e-4)
    assert jnp.allclose(v_b, rv_b, atol=1e-4, rtol=1e-4)

    print("KERNEL_OK")
</pallas_src>

<mosaic_0001>
module attributes {stable_mosaic.version = 11 : i64} {
  func.func @evoac_fused_kernel(%arg0: i32, %arg1: memref<128x17xf32, #tpu.memory_space<vmem>>, %arg2: memref<17x33xf32, #tpu.memory_space<vmem>>, %arg3: memref<33x36xf32, #tpu.memory_space<vmem>>, %arg4: memref<128x36xf32, #tpu.memory_space<vmem>>) attributes {dimension_semantics = [#tpu.dimension_semantics<parallel>], iteration_bounds = array<i64: 1>, scalar_prefetch = 0 : i64, scratch_operands = 0 : i64, tpu.core_type = #tpu.core_type<tc>, window_params = [{transform_indices = @transform_0, window_bounds = array<i64: 128, 17>}, {pipeline_mode = #tpu.pipeline_mode<synchronous>, transform_indices = @transform_1, window_bounds = array<i64: 17, 33>}, {pipeline_mode = #tpu.pipeline_mode<synchronous>, transform_indices = @transform_2, window_bounds = array<i64: 33, 36>}, {transform_indices = @transform_3, window_bounds = array<i64: 128, 36>}]} {
    %c0 = arith.constant 0 : index
    %c0_0 = arith.constant 0 : index
    %0 = vector.load %arg1[%c0, %c0_0] : memref<128x17xf32, #tpu.memory_space<vmem>>, vector<128x17xf32>
    %c0_1 = arith.constant 0 : index
    %c0_2 = arith.constant 0 : index
    %1 = vector.load %arg2[%c0_1, %c0_2] : memref<17x33xf32, #tpu.memory_space<vmem>>, vector<17x33xf32>
    %cst = arith.constant dense<0.000000e+00> : vector<128x33xf32>
    %2 = tpu.matmul %0, %1, %cst {dimension_numbers = #tpu.dot_dimension_numbers<[1], [0], [0], [1], [0, 0, 1, 1], [], []>} : vector<128x17xf32>, vector<17x33xf32>, vector<128x33xf32> -> vector<128x33xf32>
    %cst_3 = arith.constant 0.000000e+00 : f32
    %3 = vector.broadcast %cst_3 : f32 to vector<128x33xf32>
    %4 = arith.maximumf %2, %3 : vector<128x33xf32>
    %c0_4 = arith.constant 0 : index
    %c0_5 = arith.constant 0 : index
    %5 = vector.load %arg3[%c0_4, %c0_5] : memref<33x36xf32, #tpu.memory_space<vmem>>, vector<33x36xf32>
    %cst_6 = arith.constant dense<0.000000e+00> : vector<128x36xf32>
    %6 = tpu.matmul %4, %5, %cst_6 {dimension_numbers = #tpu.dot_dimension_numbers<[1], [0], [0], [1], [0, 0, 1, 1], [], []>} : vector<128x33xf32>, vector<33x36xf32>, vector<128x36xf32> -> vector<128x36xf32>
    %c0_7 = arith.constant 0 : index
    %c0_8 = arith.constant 0 : index
    %7 = vector.load %arg4[%c0_7, %c0_8] : memref<128x36xf32, #tpu.memory_space<vmem>>, vector<128x36xf32>
    tpu.vector_store %arg4[%c0_7, %c0_8], %6 {strides = array<i32>} : memref<128x36xf32, #tpu.memory_space<vmem>>, vector<128x36xf32>,
    return
  }
  func.func @transform_0(%arg0: i32) -> (i32, i32) {
    %c0_i32 = arith.constant 0 : i32
    %c0_i32_0 = arith.constant 0 : i32
    return %arg0, %c0_i32 : i32, i32
  }
  func.func @transform_1(%arg0: i32) -> (i32, i32) {
    %c0_i32 = arith.constant 0 : i32
    %c0_i32_0 = arith.constant 0 : i32
    %c0_i32_1 = arith.constant 0 : i32
    return %c0_i32, %c0_i32_0 : i32, i32
  }
  func.func @transform_2(%arg0: i32) -> (i32, i32) {
    %c0_i32 = arith.constant 0 : i32
    %c0_i32_0 = arith.constant 0 : i32
    %c0_i32_1 = arith.constant 0 : i32
    return %c0_i32, %c0_i32_0 : i32, i32
  }
  func.func @transform_3(%arg0: i32) -> (i32, i32) {
    %c0_i32 = arith.constant 0 : i32
    %c0_i32_0 = arith.constant 0 : i32
    return %arg0, %c0_i32 : i32, i32
  }
}

</mosaic_0001>

<bundles_post_ra>
// kernel: evoac_forward_all.1
= control target key start
LH: loop header
LB: loop body
LE: loop exit
PB: predicated region body
PF: predicated region fallthrough
CT: control target
= control target key end

     0   :  { %vm82_vm0 = vcmask 1040384   ;;  %vm33_vm1 = vcmask 138240   ;;  %vm172_vm2 = vcmask 269312   ;;  %vm289_vm3 = vcmask 293888   ;;  %s544_s1 = inlined_call_operand.vmem [shape: f32[17,33], index: 1, kind: input, shape index: {}]   ;;  %s545_s0 = inlined_call_operand.vmem [shape: f32[128,17], index: 0, kind: input, shape index: {}]   ;;  %s546_s2 = inlined_call_operand.vmem [shape: f32[33,36], index: 2, kind: input, shape index: {}]   ;;  %s547_s3 = inlined_call_operand.vmem [shape: f32[128,36], index: 3, kind: output, shape index: {}]  }
   0x1   :  { %v32_v0 = vld [vmem:[%s544_s1 + $0x10] sm:$0x1]  ;;  %v31_v1 = vld [vmem:[%s544_s1 + $0x8] sm:$0xff]  ;;  %v30_v2 = vld [vmem:[%s544_s1] sm:$0xff] }
   0x2   :  { %310 = vmatpush.msk.msra.mxu0 %vm82_vm0, %v32_v0  ;;  %344 = vmatpush.msk.msra.mxu3 %vm82_vm0, %v32_v0  ;;  %v14_v3 = vld [vmem:[%s545_s0] sm:$0xff]  ;;  %v15_v4 = vld [vmem:[%s545_s0 + $0x8] sm:$0xff]  ;;  %v16_v5 = vld [vmem:[%s545_s0 + $0x10] sm:$0xff] }
   0x3   :  { %v17_v6 = vld [vmem:[%s545_s0 + $0x18] sm:$0xff]  ;;  %v18_v7 = vld [vmem:[%s545_s0 + $0x20] sm:$0xff]  ;;  %v23_v8 = vld [vmem:[%s545_s0 + $0x48] sm:$0xff] }
   0x4   :  { %100 = vmatpush.msra.mxu0 %v31_v1  ;;  %345 = vmatpush.msra.mxu3 %v31_v1  ;;  %v19_v9 = vld [vmem:[%s545_s0 + $0x28] sm:$0xff]  ;;  %v24_v10 = vld [vmem:[%s545_s0 + $0x50] sm:$0xff]  ;;  %v25_v12 = vld [vmem:[%s545_s0 + $0x58] sm:$0xff] }
   0x5   :  { %v20_v11 = vld [vmem:[%s545_s0 + $0x30] sm:$0xff]  ;;  %v171_v13 = vld [vmem:[%s546_s2 + $0x20] sm:$0x1]  ;;  %v170_v14 = vld [vmem:[%s546_s2 + $0x18] sm:$0xff] }
   0x6   :  { %101 = vmatpush.msra.mxu0 %v30_v2  ;;  %346 = vmatpush.msra.mxu3 %v30_v2  ;;  %v169_v15 = vld [vmem:[%s546_s2 + $0x10] sm:$0xff]  ;;  %v21_v16 = vld [vmem:[%s545_s0 + $0x38] sm:$0xff]  ;;  %v26_v17 = vld [vmem:[%s545_s0 + $0x60] sm:$0xff] }
   0x7   :  { %311 = vmatmul.msk.f32.vlgmr.msra.gmra.mxu0 %vm33_vm1, %v14_v3  ;;  %320 = vmatmul.msk.f32.vlgmr.msra.gmra.mxu3 %vm33_vm1, %v23_v8  ;;  %v22_v18 = vld [vmem:[%s545_s0 + $0x40] sm:$0xff]  ;;  %v27_v19 = vld [vmem:[%s545_s0 + $0x68] sm:$0xff]  ;;  %v28_v20 = vld [vmem:[%s545_s0 + $0x70] sm:$0xff] }
   0x8   :  { %327 = vmatpush.msk.msra.mxu1 %vm82_vm0, %v171_v13  ;;  %347 = vmatpush.msk.msra.mxu2 %vm82_vm0, %v171_v13  ;;  %v29_v21 = vld [vmem:[%s545_s0 + $0x78] sm:$0xff]  ;;  %v168_v22 = vld [vmem:[%s546_s2 + $0x8] sm:$0xff]  ;;  %v167_v23 = vld [vmem:[%s546_s2] sm:$0xff] }
   0xa   :  { %236 = vmatpush.msra.mxu1 %v170_v14  ;;  %348 = vmatpush.msra.mxu2 %v170_v14 }
   0xc   :  { %237 = vmatpush.msra.mxu1 %v169_v15  ;;  %349 = vmatpush.msra.mxu2 %v169_v15 }
   0xe   :  { %238 = vmatpush.msra.mxu1 %v168_v22  ;;  %350 = vmatpush.msra.mxu2 %v168_v22 }
   0xf   :  { %312 = vmatmul.msk.f32.gmra.mxu0 %vm33_vm1, %v15_v4  ;;  %321 = vmatmul.msk.f32.gmra.mxu3 %vm33_vm1, %v24_v10 }
  0x10   :  { %239 = vmatpush.msra.mxu1 %v167_v23  ;;  %351 = vmatpush.msra.mxu2 %v167_v23 }
  0x17   :  { %313 = vmatmul.msk.f32.gmra.mxu0 %vm33_vm1, %v16_v5  ;;  %322 = vmatmul.msk.f32.gmra.mxu3 %vm33_vm1, %v25_v12 }
  0x1f   :  { %314 = vmatmul.msk.f32.gmra.mxu0 %vm33_vm1, %v17_v6  ;;  %323 = vmatmul.msk.f32.gmra.mxu3 %vm33_vm1, %v26_v17 }
  0x27   :  { %315 = vmatmul.msk.f32.gmra.mxu0 %vm33_vm1, %v18_v7  ;;  %324 = vmatmul.msk.f32.gmra.mxu3 %vm33_vm1, %v27_v19 }
  0x2f   :  { %316 = vmatmul.msk.f32.gmra.mxu0 %vm33_vm1, %v19_v9  ;;  %325 = vmatmul.msk.f32.gmra.mxu3 %vm33_vm1, %v28_v20 }
  0x37   :  { %317 = vmatmul.msk.f32.gmra.mxu0 %vm33_vm1, %v20_v11  ;;  %326 = vmatmul.msk.f32.gmra.mxu3 %vm33_vm1, %v29_v21 }
  0x3f   :  { %318 = vmatmul.msk.f32.gmra.mxu0 %vm33_vm1, %v21_v16 }
  0x47   :  { %319 = vmatmul.msk.f32.gmra.mxu0 %vm33_vm1, %v22_v18 }
  0x84   :  { %v103_v24 = vpop.f32.mrf.mxu0 }
  0x85   :  { %v151_v25 = vmax.f32 %v103_v24, 0.0 }
  0x87   :  { %328 = vmatmul.msk.f32.vlgmr.msra.gmra.mxu1 %vm172_vm2, %v151_v25 }
  0x8a   :  { %v130_v39 = vpop.f32.mrf.mxu3 }
  0x8b   :  { %v160_v44 = vmax.f32 %v130_v39, 0.0 }
  0x8c   :  { %v106_v26 = vpop.f32.mrf.mxu0 }
  0x8d   :  { %v152_v27 = vmax.f32 %v106_v26, 0.0 }
  0x8f   :  { %329 = vmatmul.msk.f32.gmra.mxu1 %vm172_vm2, %v152_v27 }
  0x92   :  { %v133_v43 = vpop.f32.mrf.mxu3 }
  0x93   :  { %v161_v46 = vmax.f32 %v133_v43, 0.0 }
  0x94   :  { %v109_v28 = vpop.f32.mrf.mxu0 }
  0x95   :  { %v153_v29 = vmax.f32 %v109_v28, 0.0 }
  0x97   :  { %330 = vmatmul.msk.f32.gmra.mxu1 %vm172_vm2, %v153_v29 }
  0x9a   :  { %v136_v45 = vpop.f32.mrf.mxu3 }
  0x9b   :  { %v162_v48 = vmax.f32 %v136_v45, 0.0 }
  0x9c   :  { %v112_v30 = vpop.f32.mrf.mxu0 }
  0x9d   :  { %v154_v31 = vmax.f32 %v112_v30, 0.0 }
  0x9f   :  { %331 = vmatmul.msk.f32.gmra.mxu1 %vm172_vm2, %v154_v31 }
  0xa2   :  { %v139_v47 = vpop.f32.mrf.mxu3 }
  0xa3   :  { %v163_v49 = vmax.f32 %v139_v47, 0.0 }
  0xa4   :  { %v115_v32 = vpop.f32.mrf.mxu0 }
  0xa5   :  { %v155_v33 = vmax.f32 %v115_v32, 0.0 }
  0xa7   :  { %332 = vmatmul.msk.f32.gmra.mxu1 %vm172_vm2, %v155_v33 }
  0xaa   :  { %v142_v50 = vpop.f32.mrf.mxu3 }
  0xab   :  { %v164_v51 = vmax.f32 %v142_v50, 0.0 }
  0xac   :  { %v118_v34 = vpop.f32.mrf.mxu0 }
  0xad   :  { %v156_v35 = vmax.f32 %v118_v34, 0.0 }
  0xaf   :  { %333 = vmatmul.msk.f32.gmra.mxu1 %vm172_vm2, %v156_v35 }
  0xb2   :  { %v145_v52 = vpop.f32.mrf.mxu3 }
  0xb3   :  { %v165_v53 = vmax.f32 %v145_v52, 0.0 }
  0xb4   :  { %v121_v36 = vpop.f32.mrf.mxu0 }
  0xb5   :  { %v157_v37 = vmax.f32 %v121_v36, 0.0 }
  0xb7   :  { %334 = vmatmul.msk.f32.gmra.mxu1 %vm172_vm2, %v157_v37 }
  0xba   :  { %v148_v54 = vpop.f32.mrf.mxu3 }
  0xbb   :  { %v166_v55 = vmax.f32 %v148_v54, 0.0 }
  0xbc   :  { %v124_v38 = vpop.f32.mrf.mxu0 }
  0xbd   :  { %v158_v40 = vmax.f32 %v124_v38, 0.0 }
  0xbf   :  { %335 = vmatmul.msk.f32.gmra.mxu1 %vm172_vm2, %v158_v40 }
  0xc4   :  { %v127_v41 = vpop.f32.mrf.mxu0 }
  0xc5   :  { %v159_v42 = vmax.f32 %v127_v41, 0.0 }
  0xc7   :  { %336 = vmatmul.msk.f32.vlgmr.msra.gmra.mxu2 %vm172_vm2, %v159_v42 }
  0xcf   :  { %337 = vmatmul.msk.f32.gmra.mxu2 %vm172_vm2, %v160_v44 }
  0xd7   :  { %338 = vmatmul.msk.f32.gmra.mxu2 %vm172_vm2, %v161_v46 }
  0xdf   :  { %339 = vmatmul.msk.f32.gmra.mxu2 %vm172_vm2, %v162_v48 }
  0xe7   :  { %340 = vmatmul.msk.f32.gmra.mxu2 %vm172_vm2, %v163_v49 }
  0xef   :  { %341 = vmatmul.msk.f32.gmra.mxu2 %vm172_vm2, %v164_v51 }
  0xf7   :  { %342 = vmatmul.msk.f32.gmra.mxu2 %vm172_vm2, %v165_v53 }
  0xff   :  { %343 = vmatmul.msk.f32.gmra.mxu2 %vm172_vm2, %v166_v55 }
 0x104   :  { %v241_v56 = vpop.f32.mrf.mxu1 }
 0x105   :  { %290 = vst.msk [vmem:[%s547_s3] sm:$0xff] %vm289_vm3, %v241_v56 }
 0x10c   :  { %v244_v57 = vpop.f32.mrf.mxu1 }
 0x10d   :  { %291 = vst.msk [vmem:[%s547_s3 + $0x8] sm:$0xff] %vm289_vm3, %v244_v57 }
 0x114   :  { %v247_v58 = vpop.f32.mrf.mxu1 }
 0x115   :  { %292 = vst.msk [vmem:[%s547_s3 + $0x10] sm:$0xff] %vm289_vm3, %v247_v58 }
 0x11c   :  { %v250_v59 = vpop.f32.mrf.mxu1 }
 0x11d   :  { %293 = vst.msk [vmem:[%s547_s3 + $0x18] sm:$0xff] %vm289_vm3, %v250_v59 }
 0x124   :  { %v253_v60 = vpop.f32.mrf.mxu1 }
 0x125   :  { %294 = vst.msk [vmem:[%s547_s3 + $0x20] sm:$0xff] %vm289_vm3, %v253_v60 }
 0x12c   :  { %v256_v61 = vpop.f32.mrf.mxu1 }
 0x12d   :  { %295 = vst.msk [vmem:[%s547_s3 + $0x28] sm:$0xff] %vm289_vm3, %v256_v61 }
 0x134   :  { %v259_v62 = vpop.f32.mrf.mxu1 }
 0x135   :  { %296 = vst.msk [vmem:[%s547_s3 + $0x30] sm:$0xff] %vm289_vm3, %v259_v62 }
 0x13c   :  { %v262_v63 = vpop.f32.mrf.mxu1 }
 0x13d   :  { %297 = vst.msk [vmem:[%s547_s3 + $0x38] sm:$0xff] %vm289_vm3, %v262_v63 }
 0x14a   :  { %v265_v0 = vpop.f32.mrf.mxu2 }
 0x14b   :  { %298 = vst.msk [vmem:[%s547_s3 + $0x40] sm:$0xff] %vm289_vm3, %v265_v0 }
 0x152   :  { %v268_v1 = vpop.f32.mrf.mxu2 }
 0x153   :  { %299 = vst.msk [vmem:[%s547_s3 + $0x48] sm:$0xff] %vm289_vm3, %v268_v1 }
 0x15a   :  { %v271_v2 = vpop.f32.mrf.mxu2 }
 0x15b   :  { %300 = vst.msk [vmem:[%s547_s3 + $0x50] sm:$0xff] %vm289_vm3, %v271_v2 }
 0x162   :  { %v274_v3 = vpop.f32.mrf.mxu2 }
 0x163   :  { %301 = vst.msk [vmem:[%s547_s3 + $0x58] sm:$0xff] %vm289_vm3, %v274_v3 }
 0x16a   :  { %v277_v4 = vpop.f32.mrf.mxu2 }
 0x16b   :  { %302 = vst.msk [vmem:[%s547_s3 + $0x60] sm:$0xff] %vm289_vm3, %v277_v4 }
 0x172   :  { %v280_v5 = vpop.f32.mrf.mxu2 }
 0x173   :  { %303 = vst.msk [vmem:[%s547_s3 + $0x68] sm:$0xff] %vm289_vm3, %v280_v5 }
 0x17a   :  { %v283_v6 = vpop.f32.mrf.mxu2 }
 0x17b   :  { %304 = vst.msk [vmem:[%s547_s3 + $0x70] sm:$0xff] %vm289_vm3, %v283_v6 }
 0x182   :  { %v286_v7 = vpop.f32.mrf.mxu2 }
 0x183   :  { %305 = vst.msk [vmem:[%s547_s3 + $0x78] sm:$0xff] %vm289_vm3, %v286_v7 }

</bundles_post_ra>
